<compile_context>
chip_gen: v7x
topology: tpu7x:2x2x1
jax: 0.10.0
libtpu: 0.0.40
codegen_flags: <defaults>
</compile_context>

<pallas_src>
import functools

import jax
import jax.numpy as jnp
from jax.experimental import pallas as pl
from jax.experimental.pallas import tpu as pltpu

LANES = 128
MAX_TILE_ROWS = 8192      # 8192 * 128 * 4 B = 4 MiB per f32 input block
EPS = 1e-12


def _elementwise_bce(x, t):
    """Element-wise loss exactly as the module writes it (incl. the +1e-12)."""
    x = x.astype(jnp.float32)
    t = t.astype(jnp.float32)
    # NOTE: matches the module's formula; does not replicate torch.nn.BCELoss's
    # clamp-to--100 behaviour at x exactly 0 or 1.
    return -t * jnp.log(x + EPS) - (1.0 - t) * jnp.log(1.0 - x + EPS)


def _bce_kernel(x_ref, t_ref, out_ref, *, tile_rows, rows_last, needs_row_mask):
    """Accumulate partial sums of the element-wise BCE loss.

    out_ref is an (8, 128) f32 block resident across the 1-D 'arbitrary' grid;
    the wrapper finishes the cross-lane sum and the mean.
    """
    j = pl.program_id(0)

    @pl.when(j == 0)
    def _init():
        out_ref[...] = jnp.zeros_like(out_ref)

    def block_partial(valid_rows=None):
        # Loss + fold computed entirely inside the enclosing pl.when branch so
        # the (tile_rows, 128) temp never crosses an scf.if boundary (would
        # otherwise force a block-sized VMEM materialization every step).
        loss = _elementwise_bce(x_ref[...], t_ref[...])
        if valid_rows is not None:
            row = jax.lax.broadcasted_iota(jnp.int32, loss.shape, 0)
            # Out-of-bounds rows of a partial edge block hold unspecified data;
            # jnp.where is a true select so NaNs there do not propagate.
            loss = jnp.where(row < valid_rows, loss, 0.0)
        # (tile_rows, 128) -> (8, 128): pure vreg-wise VALU adds (no XLU work).
        return loss.reshape(tile_rows // 8, 8, LANES).sum(axis=0)

    if needs_row_mask:
        is_last = j == pl.num_programs(0) - 1

        @pl.when(jnp.logical_not(is_last))
        def _bulk():
            out_ref[...] += block_partial()

        @pl.when(is_last)
        def _edge():
            out_ref[...] += block_partial(rows_last)
    else:
        out_ref[...] += block_partial()


def binary_cross_entropy_loss(inputs, targets, *, max_tile_rows=MAX_TILE_ROWS):
    """Pallas BCE loss (mean reduction). inputs/targets: same shape, e.g. NCHW."""
    assert inputs.shape == targets.shape, "Shapes of inputs and targets must match."
    total = inputs.size

    x_flat = inputs.reshape(-1)
    t_flat = targets.reshape(-1)

    # Sublane quantum: 8 for 32-bit dtypes, 16 if any input is 16-bit packed.
    sub = 8 if (x_flat.dtype.itemsize >= 4 and t_flat.dtype.itemsize >= 4) else 16

    full_rows = total // LANES                       # complete 128-lane rows
    kernel_rows = full_rows if full_rows >= sub else 0
    kernel_elems = kernel_rows * LANES

    loss_sum = jnp.float32(0.0)

    # Remainder (lane tail and/or inputs smaller than one tile): tiny XLA
    # expression instead of an O(N) pad copy of both inputs.
    if kernel_elems < total:
        loss_sum = loss_sum + jnp.sum(
            _elementwise_bce(x_flat[kernel_elems:], t_flat[kernel_elems:]))

    if kernel_rows > 0:
        # Prefix slice + reshape: free when total is 128-divisible; at worst a
        # prefix view for the unaligned case (no padded copy, no host astype —
        # the f32 cast happens on the VPU inside the kernel).
        x2d = x_flat[:kernel_elems].reshape(kernel_rows, LANES)
        t2d = t_flat[:kernel_elems].reshape(kernel_rows, LANES)

        tile_rows = min((max_tile_rows // sub) * sub, (kernel_rows // sub) * sub)
        tile_rows = max(tile_rows, sub)
        num_blocks = pl.cdiv(kernel_rows, tile_rows)
        rows_last = kernel_rows - (num_blocks - 1) * tile_rows
        needs_row_mask = rows_last != tile_rows

        kernel = functools.partial(
            _bce_kernel, tile_rows=tile_rows, rows_last=rows_last,
            needs_row_mask=needs_row_mask)

        # 2 pipeline buffers x (x block + t block) + headroom for the (8,128)
        # accumulator / internal scratch. 8192-row f32 tiles -> 32 MiB total,
        # comfortably below physical VMEM on every generation (v5e/v6e 128 MiB,
        # v7x 64 MiB).
        block_bytes = tile_rows * LANES * (x2d.dtype.itemsize + t2d.dtype.itemsize)
        vmem_limit = int(min(2 * block_bytes + (16 << 20), 48 << 20))

        partial = pl.pallas_call(
            kernel,
            out_shape=jax.ShapeDtypeStruct((8, LANES), jnp.float32),
            grid_spec=pltpu.PrefetchScalarGridSpec(
                num_scalar_prefetch=0,
                grid=(num_blocks,),
                in_specs=[
                    pl.BlockSpec((tile_rows, LANES), lambda j: (j, 0)),
                    pl.BlockSpec((tile_rows, LANES), lambda j: (j, 0)),
                ],
                out_specs=pl.BlockSpec((8, LANES), lambda j: (0, 0)),
            ),
            compiler_params=pltpu.CompilerParams(
                dimension_semantics=("arbitrary",),
                vmem_limit_bytes=vmem_limit),
        )(x2d, t2d)

        loss_sum = loss_sum + jnp.sum(partial)

    # Tiny finalize: mean over all elements.
    return loss_sum / jnp.float32(total)


def _reference(inputs, targets):
    return jnp.mean(_elementwise_bce(inputs, targets))


if __name__ == "__main__":
    key = jax.random.PRNGKey(0)
    k1, k2 = jax.random.split(key)

    # Primary test: NCHW, predicted probabilities in (0,1), binary targets.
    shape = (2, 4, 16, 16)
    inputs = jax.nn.sigmoid(jax.random.normal(k1, shape, dtype=jnp.float32))
    targets = (jax.random.uniform(k2, shape) > 0.5).astype(jnp.float32)
    loss = jax.block_until_ready(binary_cross_entropy_loss(inputs, targets))
    ref = _reference(inputs, targets)
    assert jnp.allclose(loss, ref, rtol=1e-5, atol=1e-6), (loss, ref)

    # Non-128-divisible size: XLA lane-tail + masked partial last block.
    shape2 = (2, 3, 17, 19)
    k3, k4 = jax.random.split(k1)
    x2 = jax.nn.sigmoid(jax.random.normal(k3, shape2, dtype=jnp.float32))
    t2 = (jax.random.uniform(k4, shape2) > 0.5).astype(jnp.float32)
    l2 = jax.block_until_ready(binary_cross_entropy_loss(x2, t2))
    assert jnp.allclose(l2, _reference(x2, t2), rtol=1e-5, atol=1e-6), (l2,)

    # Multi-block accumulation with a masked partial last block (forced small tile).
    shape3 = (4, 16, 96, 96)
    k5, k6 = jax.random.split(k2)
    x3 = jax.nn.sigmoid(jax.random.normal(k5, shape3, dtype=jnp.float32))
    t3 = (jax.random.uniform(k6, shape3) > 0.5).astype(jnp.float32)
    l3 = jax.block_until_ready(
        binary_cross_entropy_loss(x3, t3, max_tile_rows=2048))
    assert jnp.allclose(l3, _reference(x3, t3), rtol=1e-4, atol=1e-6), (l3,)
    # Same data through the default big-tile (single block, no mask) path.
    l3b = jax.block_until_ready(binary_cross_entropy_loss(x3, t3))
    assert jnp.allclose(l3b, _reference(x3, t3), rtol=1e-4, atol=1e-6), (l3b,)

    # Tiny input (< one (8,128) tile): pure-XLA fallback path.
    shape4 = (2, 3, 5, 7)
    k7, k8 = jax.random.split(k3)
    x4 = jax.nn.sigmoid(jax.random.normal(k7, shape4, dtype=jnp.float32))
    t4 = (jax.random.uniform(k8, shape4) > 0.5).astype(jnp.float32)
    l4 = jax.block_until_ready(binary_cross_entropy_loss(x4, t4))
    assert jnp.allclose(l4, _reference(x4, t4), rtol=1e-5, atol=1e-6), (l4,)

    print("KERNEL_OK")
</pallas_src>

<mosaic_0001>
module attributes {stable_mosaic.version = 11 : i64} {
  func.func @_bce_kernel(%arg0: i32, %arg1: memref<16x128xf32, #tpu.memory_space<vmem>>, %arg2: memref<16x128xf32, #tpu.memory_space<vmem>>, %arg3: memref<8x128xf32, #tpu.memory_space<vmem>>) attributes {dimension_semantics = [#tpu.dimension_semantics<arbitrary>], iteration_bounds = array<i64: 1>, scalar_prefetch = 0 : i64, scratch_operands = 0 : i64, tpu.core_type = #tpu.core_type<tc>, window_params = [{transform_indices = @transform_0, window_bounds = array<i64: 16, 128>}, {transform_indices = @transform_1, window_bounds = array<i64: 16, 128>}, {pipeline_mode = #tpu.pipeline_mode<synchronous>, transform_indices = @transform_2, window_bounds = array<i64: 8, 128>}]} {
    %c0_i32 = arith.constant 0 : i32
    %0 = arith.cmpi eq, %arg0, %c0_i32 : i32
    %1 = arith.extui %0 : i1 to i32
    %c0_i32_0 = arith.constant 0 : i32
    %2 = arith.cmpi ne, %1, %c0_i32_0 : i32
    scf.if %2 {
      %cst_13 = arith.constant 0.000000e+00 : f32
      %25 = vector.broadcast %cst_13 : f32 to vector<8x128xf32>
      %c0_14 = arith.constant 0 : index
      %c0_15 = arith.constant 0 : index
      %26 = vector.load %arg3[%c0_14, %c0_15] : memref<8x128xf32, #tpu.memory_space<vmem>>, vector<8x128xf32>
      tpu.vector_store %arg3[%c0_14, %c0_15], %25 {strides = array<i32>} : memref<8x128xf32, #tpu.memory_space<vmem>>, vector<8x128xf32>,
    } else {
    }
    %c0 = arith.constant 0 : index
    %c0_1 = arith.constant 0 : index
    %3 = vector.load %arg3[%c0, %c0_1] : memref<8x128xf32, #tpu.memory_space<vmem>>, vector<8x128xf32>
    %c0_2 = arith.constant 0 : index
    %c0_3 = arith.constant 0 : index
    %4 = vector.load %arg1[%c0_2, %c0_3] : memref<16x128xf32, #tpu.memory_space<vmem>>, vector<16x128xf32>
    %c0_4 = arith.constant 0 : index
    %c0_5 = arith.constant 0 : index
    %5 = vector.load %arg2[%c0_4, %c0_5] : memref<16x128xf32, #tpu.memory_space<vmem>>, vector<16x128xf32>
    %cst = arith.constant 0.000000e+00 : f32
    %6 = vector.broadcast %cst : f32 to vector<16x128xf32>
    %7 = arith.subf %6, %5 : vector<16x128xf32>
    %cst_6 = arith.constant 9.99999996E-13 : f32
    %8 = vector.broadcast %cst_6 : f32 to vector<16x128xf32>
    %9 = arith.addf %4, %8 : vector<16x128xf32>
    %10 = math.log %9 : vector<16x128xf32>
    %11 = arith.mulf %7, %10 : vector<16x128xf32>
    %cst_7 = arith.constant 1.000000e+00 : f32
    %12 = vector.broadcast %cst_7 : f32 to vector<16x128xf32>
    %13 = arith.subf %12, %5 : vector<16x128xf32>
    %cst_8 = arith.constant 1.000000e+00 : f32
    %14 = vector.broadcast %cst_8 : f32 to vector<16x128xf32>
    %15 = arith.subf %14, %4 : vector<16x128xf32>
    %cst_9 = arith.constant 9.99999996E-13 : f32
    %16 = vector.broadcast %cst_9 : f32 to vector<16x128xf32>
    %17 = arith.addf %15, %16 : vector<16x128xf32>
    %18 = math.log %17 : vector<16x128xf32>
    %19 = arith.mulf %13, %18 : vector<16x128xf32>
    %20 = arith.subf %11, %19 : vector<16x128xf32>
    %21 = vector.shape_cast %20 : vector<16x128xf32> to vector<2x8x128xf32>
    %cst_10 = arith.constant dense<0.000000e+00> : vector<8x128xf32>
    %22 = vector.multi_reduction <add>, %21, %cst_10 [0] : vector<2x8x128xf32> to vector<8x128xf32>
    %23 = arith.addf %3, %22 : vector<8x128xf32>
    %c0_11 = arith.constant 0 : index
    %c0_12 = arith.constant 0 : index
    %24 = vector.load %arg3[%c0_11, %c0_12] : memref<8x128xf32, #tpu.memory_space<vmem>>, vector<8x128xf32>
    tpu.vector_store %arg3[%c0_11, %c0_12], %23 {strides = array<i32>} : memref<8x128xf32, #tpu.memory_space<vmem>>, vector<8x128xf32>,
    return
  }
  func.func @transform_0(%arg0: i32) -> (i32, i32) {
    %c0_i32 = arith.constant 0 : i32
    %c0_i32_0 = arith.constant 0 : i32
    return %arg0, %c0_i32 : i32, i32
  }
  func.func @transform_1(%arg0: i32) -> (i32, i32) {
    %c0_i32 = arith.constant 0 : i32
    %c0_i32_0 = arith.constant 0 : i32
    return %arg0, %c0_i32 : i32, i32
  }
  func.func @transform_2(%arg0: i32) -> (i32, i32) {
    %c0_i32 = arith.constant 0 : i32
    %c0_i32_0 = arith.constant 0 : i32
    %c0_i32_1 = arith.constant 0 : i32
    return %c0_i32, %c0_i32_0 : i32, i32
  }
}

</mosaic_0001>

<bundles_post_ra>
// kernel: tpu_custom_call.1
= control target key start
LH: loop header
LB: loop body
LE: loop exit
PB: predicated region body
PF: predicated region fallthrough
CT: control target
= control target key end

     0   :  { %7 = vsyncpa [#allocation3], 0  ;;  %s235_s0 = inlined_call_operand.hbm [shape: f32[16,128], index: 0, kind: input, shape index: {}]   ;;  %s236_s1 = inlined_call_operand.hbm [shape: f32[16,128], index: 1, kind: input, shape index: {}]   ;;  %s237_s2 = inlined_call_operand.hbm [shape: f32[8,128], index: 2, kind: output, shape index: {}]  }
   0x1   :  { %8 = vsyncpa [#allocation6], 0 }
   0x2   :  { %9 = vsyncpa [#allocation4], 0  ;;  %s179_s9 = smov [#allocation2]   ;;  %s107_s13 = scalar_lea.hbm %s235_s0, 256 }
   0x3   :  { %s15_s10 = sshll.u32 %s179_s9, 4  ;;  %p108_p0 = scmp.ne.s32.totalorder %s235_s0, %s107_s13  ;;  %s16_s10 = int_to_ptr.vmem [resolvable:$true] %s15_s10 }
   0x4   :  { %p111_p1 = scmp.lt.u32.totalorder %s107_s13, %s235_s0 }
   0x6   :  { %p113_p2 = pnand %p111_p1, %p108_p0 }
   0x8   :  { %116 = shalt.err (!%p113_p2)
}
   0x9   :  { %s117_s18 = scalar_lea.vmem %s16_s10, 256  ;;  %p122_p4 = scmp.lt.s32.totalorder %s16_s10, %s16_s10 }
   0xa   :  { %p118_p3 = scmp.ne.s32.totalorder %s16_s10, %s117_s18  ;;  %p123_p5 = scmp.lt.s32.totalorder %s117_s18, %s117_s18 }
   0xc   :  { %p124_p6 = por %p123_p5, %p122_p4 }
   0xe   :  { %p125_p7 = pnand %p124_p6, %p118_p3 }
  0x10   :  { %128 = shalt.err (!%p125_p7)
}
  0x11   :  { %s180_s19 = smov 128   ;;  %s181_s20 = smov 8  }
  0x12   :  { %21 = dma.hbm_to_vmem [thread:$0]  %s235_s0, 256, %s16_s10, [#allocation3], %s180_s19, %s180_s19, %s181_s20  }
  0x13   :  { %s182_s23 = smov [#allocation5]   ;;  %s129_s27 = scalar_lea.hbm %s236_s1, 256 }
  0x14   :  { %s27_s24 = sshll.u32 %s182_s23, 4  ;;  %p130_p8 = scmp.ne.s32.totalorder %s236_s1, %s129_s27  ;;  %s28_s24 = int_to_ptr.vmem [resolvable:$true] %s27_s24 }
  0x15   :  { %p133_p9 = scmp.lt.u32.totalorder %s129_s27, %s236_s1 }
  0x17   :  { %p135_p10 = pnand %p133_p9, %p130_p8 }
  0x19   :  { %138 = shalt.err (!%p135_p10)
}
  0x1a   :  { %s139_s4 = scalar_lea.vmem %s28_s24, 256  ;;  %p144_p12 = scmp.lt.s32.totalorder %s28_s24, %s28_s24 }
  0x1b   :  { %p140_p11 = scmp.ne.s32.totalorder %s28_s24, %s139_s4  ;;  %p145_p13 = scmp.lt.s32.totalorder %s139_s4, %s139_s4 }
  0x1d   :  { %p146_p0 = por %p145_p13, %p144_p12 }
  0x1f   :  { %p147_p1 = pnand %p146_p0, %p140_p11 }
  0x21   :  { %150 = shalt.err (!%p147_p1)
}
  0x22   :  { %33 = dma.hbm_to_vmem [thread:$0]  %s236_s1, 256, %s28_s24, [#allocation6], %s180_s19, %s180_s19, %s181_s20  }
  0x23   :  { %173 = dma.done.wait [#allocation3], 256  }
  0x24   :  { %174 = vsyncadd [#allocation3], 4294967040 }
  0x25   :  { %175 = dma.done.wait [#allocation6], 256  }
  0x26   :  { %176 = vsyncadd [#allocation6], 4294967040  ;;  %v46_v0 = vld [vmem:[#allocation2] sm:$0xff]  ;;  %v47_v1 = vld [vmem:[#allocation2 + $0x8] sm:$0xff]  ;;  %s183_s1 = smov [#allocation7]  }
  0x27   :  { %v52_v2 = vadd.f32 1e-12, %v46_v0  ;;  %v53_v3 = vadd.f32 1e-12, %v47_v1  ;;  %v62_v4 = vsub.f32 1.0, %v46_v0  ;;  %v63_v5 = vsub.f32 1.0, %v47_v1 }
  0x28   :  { %v48_v8 = vld [vmem:[#allocation5] sm:$0xff]  ;;  %v49_v9 = vld [vmem:[#allocation5 + $0x8] sm:$0xff]  ;;  %s83_s6 = sshll.u32 %s183_s1, 4  ;;  %s84_s6 = int_to_ptr.vmem [resolvable:$true] %s83_s6 }
  0x29   :  { %99 = vlog2.f32 %v52_v2  ;;  %v64_v6 = vadd.f32 1e-12, %v62_v4  ;;  %v65_v7 = vadd.f32 1e-12, %v63_v5  ;;  %v50_v11 = vsub.f32 0.0, %v48_v8  ;;  %s151_s7 = scalar_lea.vmem %s84_s6, 128  ;;  %p156_p3 = scmp.lt.s32.totalorder %s84_s6, %s84_s6 }
  0x2a   :  { %101 = vlog2.f32 %v53_v3  ;;  %v51_v13 = vsub.f32 0.0, %v49_v9  ;;  %v60_v16 = vsub.f32 1.0, %v48_v8  ;;  %v61_v18 = vsub.f32 1.0, %v49_v9  ;;  %p152_p2 = scmp.ne.s32.totalorder %s84_s6, %s151_s7  ;;  %p157_p4 = scmp.lt.s32.totalorder %s151_s7, %s151_s7 }
  0x2b   :  { %103 = vlog2.f32 %v64_v6 }
  0x2c   :  { %105 = vlog2.f32 %v65_v7  ;;  %p158_p5 = por %p157_p4, %p156_p3 }
  0x2e   :  { %p159_p6 = pnand %p158_p5, %p152_p2 }
  0x33   :  { %v100_v10 = vpop.eup %99 }
  0x34   :  { %v102_v12 = vpop.eup %101  ;;  %v55_v14 = vmul.f32 0.6931472, %v100_v10 }
  0x35   :  { %v57_v15 = vmul.f32 0.6931472, %v102_v12  ;;  %v104_v17 = vpop.eup %103 }
  0x36   :  { %v106_v19 = vpop.eup %105  ;;  %v58_v20 = vmul.f32 %v55_v14, %v50_v11  ;;  %v67_v21 = vmul.f32 0.6931472, %v104_v17 }
  0x37   :  { %v59_v22 = vmul.f32 %v57_v15, %v51_v13  ;;  %v69_v23 = vmul.f32 0.6931472, %v106_v19 }
  0x38   :  { %v70_v24 = vmul.f32 %v67_v21, %v60_v16 }
  0x39   :  { %v71_v25 = vmul.f32 %v69_v23, %v61_v18 }
  0x3a   :  { %v72_v26 = vsub.f32 %v58_v20, %v70_v24 }
  0x3b   :  { %v73_v27 = vsub.f32 %v59_v22, %v71_v25 }
  0x3d   :  { %v74_v28 = vadd.f32 %v73_v27, %v72_v26 }
  0x3f   :  { %76 = vst [vmem:[#allocation7] sm:$0xff] %v74_v28 }
  0x40   :  { %162 = shalt.err (!%p159_p6)
}
  0x41   :  { %s163_s10 = scalar_lea.hbm %s237_s2, 128 }
  0x42   :  { %p164_p7 = scmp.ne.s32.totalorder %s237_s2, %s163_s10  ;;  %p167_p8 = scmp.lt.u32.totalorder %s163_s10, %s237_s2 }
  0x44   :  { %p169_p9 = pnand %p167_p8, %p164_p7 }
  0x46   :  { %172 = shalt.err (!%p169_p9)
}
  0x47   :  { %86 = dma.vmem_to_hbm [thread:$0]  %s84_s6, 128, %s237_s2, [#allocation4]  }
  0x48   :  { %177 = dma.done.wait [#allocation4], 128  }
  0x49   :  { %178 = vsyncadd [#allocation4], 4294967168 }
  0x4a   :  { %90 = vsyncpa [#allocation3], 1 }
  0x4b   :  { %91 = vsyncpa [#allocation6], 1 }
  0x4c   :  { %92 = vsyncpa [#allocation4], 1 }

</bundles_post_ra>
